<compile_context>
chip_gen: v7x
topology: tpu7x:2x2x1
jax: 0.10.0
libtpu: 0.0.40
codegen_flags: <defaults>
</compile_context>

<pallas_src>
import math

import jax
import jax.numpy as jnp
from jax.experimental import pallas as pl
from jax.experimental.pallas import tpu as pltpu


_LANE = 128
_SUBLANE_MIN = {4: 8, 2: 16, 1: 32}   # packed-sublane minimum per itemsize


# ----------------------------------------------------------------------------
# Swish: x * sigmoid(beta * x)
# ----------------------------------------------------------------------------
def _swish_kernel(beta_ref, x_ref, o_ref):
    beta = beta_ref[0]                              # f32 scalar from SMEM
    xf = x_ref[...].astype(jnp.float32)             # one cast, reused
    sig = 1.0 / (1.0 + jnp.exp(-(beta * xf)))       # EUP exp + VPU divide
    o_ref[...] = (xf * sig).astype(o_ref.dtype)


def swish(x, beta):
    """Elementwise x * sigmoid(beta * x) for an arbitrary-shape array."""
    orig_shape = x.shape
    dtype = x.dtype
    n = int(x.size)
    itemsize = jnp.dtype(dtype).itemsize
    min_sub = _SUBLANE_MIN.get(itemsize, 8)

    # Lane-dense row length: largest of 2048..128 that divides n (static check,
    # so the common divisible case never pads / slices).
    row_len = next((rl for rl in (2048, 1024, 512, 256, 128) if n % rl == 0), None)

    flat = x.reshape(-1)
    pad = 0
    if row_len is None:                              # rare fallback: pad tail only
        row_len = _LANE
        pad = (-n) % row_len
    n_rows = (n + pad) // row_len

    # Block rows: ~1 MiB per block, multiple of the packed sublane minimum,
    # evenly dividing n_rows (no partial grid steps).
    max_rows = max(min_sub, (1 << 20) // (row_len * itemsize))
    if n_rows <= max_rows:
        block_rows = n_rows                          # whole slab, single grid step
    else:
        if n_rows % min_sub:
            extra_rows = (-n_rows) % min_sub
            pad += extra_rows * row_len
            n_rows += extra_rows
        block_rows = min_sub
        r = min_sub
        while r <= max_rows:                         # trace-time Python only
            if n_rows % r == 0:
                block_rows = r
            r += min_sub

    if pad:
        flat = jnp.pad(flat, (0, pad))               # only in the non-divisible path
    x2d = flat.reshape(n_rows, row_len)

    beta_arr = jnp.asarray(beta, dtype=jnp.float32).reshape((1,))
    grid = (n_rows // block_rows,)

    out2d = pl.pallas_call(
        _swish_kernel,
        out_shape=jax.ShapeDtypeStruct((n_rows, row_len), dtype),
        grid_spec=pltpu.PrefetchScalarGridSpec(
            num_scalar_prefetch=0,
            grid=grid,
            in_specs=[
                pl.BlockSpec(memory_space=pltpu.SMEM),                   # beta
                pl.BlockSpec((block_rows, row_len), lambda i: (i, 0)),   # x slab
            ],
            out_specs=pl.BlockSpec((block_rows, row_len), lambda i: (i, 0)),
        ),
        compiler_params=pltpu.CompilerParams(
            dimension_semantics=("parallel",)),
    )(beta_arr, x2d)

    out = out2d.reshape(-1)
    if pad:
        out = out[:n]
    return out.reshape(orig_shape)


# ----------------------------------------------------------------------------
# Linear (PyTorch semantics: y = x @ W^T + b, W: (out_features, in_features))
# ----------------------------------------------------------------------------
def _linear_kernel(x_ref, wt_ref, b_ref, o_ref):
    acc = jnp.dot(x_ref[...], wt_ref[...], preferred_element_type=jnp.float32)
    o_ref[...] = (acc + b_ref[...]).astype(o_ref.dtype)


def _batch_block(batch, cap=256):
    """Largest multiple of 8 that divides `batch` and is <= cap; else the full batch."""
    if batch <= cap or batch % 8 != 0:
        return batch
    best = 8
    r = 8
    while r <= cap:
        if batch % r == 0:
            best = r
        r += 8
    return best


def linear(x, w, b):
    batch, k = x.shape
    n = w.shape[0]
    wt = jnp.transpose(w)          # (K, N): output features on the lane axis
    b2 = b.reshape(1, n)
    blk = _batch_block(batch)
    grid = (batch // blk,)
    return pl.pallas_call(
        _linear_kernel,
        out_shape=jax.ShapeDtypeStruct((batch, n), x.dtype),
        grid_spec=pltpu.PrefetchScalarGridSpec(
            num_scalar_prefetch=0,
            grid=grid,
            in_specs=[
                pl.BlockSpec((blk, k), lambda i: (i, 0)),
                pl.BlockSpec((k, n), lambda i: (0, 0)),
                pl.BlockSpec((1, n), lambda i: (0, 0)),
            ],
            out_specs=pl.BlockSpec((blk, n), lambda i: (i, 0)),
        ),
        compiler_params=pltpu.CompilerParams(
            dimension_semantics=("parallel",)),
    )(x, wt, b2)


# ----------------------------------------------------------------------------
# Row-wise L2 normalization (x / ||x||_2 along the last dim)
# ----------------------------------------------------------------------------
def _l2norm_kernel(x_ref, o_ref):
    xf = x_ref[...].astype(jnp.float32)
    nrm = jnp.sqrt(jnp.sum(xf * xf, axis=-1, keepdims=True))
    o_ref[...] = (xf / nrm).astype(o_ref.dtype)


def l2_normalize(x):
    batch, d = x.shape
    blk = _batch_block(batch)
    grid = (batch // blk,)
    return pl.pallas_call(
        _l2norm_kernel,
        out_shape=jax.ShapeDtypeStruct((batch, d), x.dtype),
        grid_spec=pltpu.PrefetchScalarGridSpec(
            num_scalar_prefetch=0,
            grid=grid,
            in_specs=[pl.BlockSpec((blk, d), lambda i: (i, 0))],
            out_specs=pl.BlockSpec((blk, d), lambda i: (i, 0)),
        ),
        compiler_params=pltpu.CompilerParams(
            dimension_semantics=("parallel",)),
    )(x)


# ----------------------------------------------------------------------------
# Full SXRNetLinCos forward
# ----------------------------------------------------------------------------
def sxrnet_lincos_forward(params, x):
    # encoder
    h = linear(x, params["enc1_w"], params["enc1_b"])
    h = swish(h, params["beta_enc1"])
    h = linear(h, params["enc2_w"], params["enc2_b"])
    h = swish(h, params["beta_enc2"])
    # unit-normalize the latent
    h = l2_normalize(h)
    # decoder
    h = linear(h, params["dec1_w"], params["dec1_b"])
    h = swish(h, params["beta_dec1"])
    h = linear(h, params["dec2_w"], params["dec2_b"])
    h = swish(h, params["beta_dec2"])
    out_size = int(math.isqrt(params["dec2_w"].shape[0]))
    return h.reshape(-1, out_size, out_size)   # Reshape module: metadata-only


def sxrnet_lincos_reference(params, x):
    """Plain-JAX reference of the same forward pass."""
    hp = jax.lax.Precision.HIGHEST

    def sw(v, beta):
        return v * jax.nn.sigmoid(beta * v)

    h = jnp.dot(x, params["enc1_w"].T, precision=hp) + params["enc1_b"]
    h = sw(h, params["beta_enc1"])
    h = jnp.dot(h, params["enc2_w"].T, precision=hp) + params["enc2_b"]
    h = sw(h, params["beta_enc2"])
    h = h / jnp.linalg.norm(h, axis=-1, keepdims=True)
    h = jnp.dot(h, params["dec1_w"].T, precision=hp) + params["dec1_b"]
    h = sw(h, params["beta_dec1"])
    h = jnp.dot(h, params["dec2_w"].T, precision=hp) + params["dec2_b"]
    h = sw(h, params["beta_dec2"])
    out_size = int(math.isqrt(params["dec2_w"].shape[0]))
    return h.reshape(-1, out_size, out_size)


if __name__ == "__main__":
    key = jax.random.PRNGKey(0)
    batch, input_size, output_size, latent_size, hidden = 8, 32, 16, 16, 64

    ks = jax.random.split(key, 10)

    def init_linear(kw, kb, fan_in, fan_out):
        bound = fan_in ** -0.5          # PyTorch Linear default init range
        w = jax.random.uniform(kw, (fan_out, fan_in), jnp.float32, -bound, bound)
        b = jax.random.uniform(kb, (fan_out,), jnp.float32, -bound, bound)
        return w, b

    enc1_w, enc1_b = init_linear(ks[0], ks[1], input_size, hidden)
    enc2_w, enc2_b = init_linear(ks[2], ks[3], hidden, latent_size)
    dec1_w, dec1_b = init_linear(ks[4], ks[5], latent_size, hidden)
    dec2_w, dec2_b = init_linear(ks[6], ks[7], hidden, output_size * output_size)

    params = {
        "enc1_w": enc1_w, "enc1_b": enc1_b, "beta_enc1": jnp.float32(1.0),
        "enc2_w": enc2_w, "enc2_b": enc2_b, "beta_enc2": jnp.float32(1.0),
        "dec1_w": dec1_w, "dec1_b": dec1_b, "beta_dec1": jnp.float32(1.0),
        "dec2_w": dec2_w, "dec2_b": dec2_b, "beta_dec2": jnp.float32(1.0),
    }

    x = jax.random.normal(ks[8], (batch, input_size), jnp.float32)

    out = jax.jit(sxrnet_lincos_forward)(params, x)
    out = jax.block_until_ready(out)

    ref = sxrnet_lincos_reference(params, x)
    assert out.shape == (batch, output_size, output_size)
    assert out.dtype == x.dtype
    assert jnp.allclose(out, ref, atol=2e-4, rtol=2e-4), float(jnp.max(jnp.abs(out - ref)))

    # Also exercise the tiled, multi-block swish path: 4 MiB slab -> 4 parallel
    # grid steps of (128, 2048) blocks (lane-dense, ~1 MiB each, no padding).
    big = jax.random.normal(ks[9], (512, 2048), jnp.float32)
    big_out = jax.block_until_ready(swish(big, jnp.float32(0.75)))
    big_ref = big * jax.nn.sigmoid(0.75 * big)
    assert jnp.allclose(big_out, big_ref, atol=1e-5, rtol=1e-5)

    print("KERNEL_OK")
</pallas_src>

<mosaic_0001>
module attributes {stable_mosaic.version = 11 : i64} {
  func.func @_swish_kernel(%arg0: i32, %arg1: memref<1xf32, #tpu.memory_space<smem>>, %arg2: memref<1x512xf32, #tpu.memory_space<vmem>>, %arg3: memref<1x512xf32, #tpu.memory_space<vmem>>) attributes {dimension_semantics = [#tpu.dimension_semantics<parallel>], iteration_bounds = array<i64: 1>, scalar_prefetch = 0 : i64, scratch_operands = 0 : i64, tpu.core_type = #tpu.core_type<tc>, window_params = [{transform_indices = @transform_0, window_bounds = array<i64: 1>}, {transform_indices = @transform_1, window_bounds = array<i64: 1, 512>}, {transform_indices = @transform_2, window_bounds = array<i64: 1, 512>}]} {
    %c0 = arith.constant 0 : index
    %0 = memref.load %arg1[%c0] : memref<1xf32, #tpu.memory_space<smem>>
    %c0_0 = arith.constant 0 : index
    %c0_1 = arith.constant 0 : index
    %1 = vector.load %arg2[%c0_0, %c0_1] : memref<1x512xf32, #tpu.memory_space<vmem>>, vector<1x512xf32>
    %2 = vector.broadcast %0 : f32 to vector<1x512xf32>
    %3 = arith.mulf %2, %1 : vector<1x512xf32>
    %cst = arith.constant 0.000000e+00 : f32
    %4 = vector.broadcast %cst : f32 to vector<1x512xf32>
    %5 = arith.subf %4, %3 : vector<1x512xf32>
    %6 = math.exp %5 : vector<1x512xf32>
    %cst_2 = arith.constant 1.000000e+00 : f32
    %7 = vector.broadcast %cst_2 : f32 to vector<1x512xf32>
    %8 = arith.addf %7, %6 : vector<1x512xf32>
    %cst_3 = arith.constant 1.000000e+00 : f32
    %9 = vector.broadcast %cst_3 : f32 to vector<1x512xf32>
    %10 = arith.divf %9, %8 : vector<1x512xf32>
    %11 = arith.mulf %1, %10 : vector<1x512xf32>
    %c0_4 = arith.constant 0 : index
    %c0_5 = arith.constant 0 : index
    %12 = vector.load %arg3[%c0_4, %c0_5] : memref<1x512xf32, #tpu.memory_space<vmem>>, vector<1x512xf32>
    tpu.vector_store %arg3[%c0_4, %c0_5], %11 {strides = array<i32>} : memref<1x512xf32, #tpu.memory_space<vmem>>, vector<1x512xf32>,
    return
  }
  func.func @transform_0(%arg0: i32) -> i32 {
    %c0_i32 = arith.constant 0 : i32
    %c0_i32_0 = arith.constant 0 : i32
    return %c0_i32 : i32
  }
  func.func @transform_1(%arg0: i32) -> (i32, i32) {
    %c0_i32 = arith.constant 0 : i32
    %c0_i32_0 = arith.constant 0 : i32
    return %arg0, %c0_i32 : i32, i32
  }
  func.func @transform_2(%arg0: i32) -> (i32, i32) {
    %c0_i32 = arith.constant 0 : i32
    %c0_i32_0 = arith.constant 0 : i32
    return %arg0, %c0_i32 : i32, i32
  }
}

module attributes {stable_mosaic.version = 11 : i64} {
  func.func @_linear_kernel(%arg0: i32, %arg1: memref<8x32xf32, #tpu.memory_space<vmem>>, %arg2: memref<32x64xf32, #tpu.memory_space<vmem>>, %arg3: memref<1x64xf32, #tpu.memory_space<vmem>>, %arg4: memref<8x64xf32, #tpu.memory_space<vmem>>) attributes {dimension_semantics = [#tpu.dimension_semantics<parallel>], iteration_bounds = array<i64: 1>, scalar_prefetch = 0 : i64, scratch_operands = 0 : i64, tpu.core_type = #tpu.core_type<tc>, window_params = [{transform_indices = @transform_0, window_bounds = array<i64: 8, 32>}, {pipeline_mode = #tpu.pipeline_mode<synchronous>, transform_indices = @transform_1, window_bounds = array<i64: 32, 64>}, {pipeline_mode = #tpu.pipeline_mode<synchronous>, transform_indices = @transform_2, window_bounds = array<i64: 1, 64>}, {transform_indices = @transform_3, window_bounds = array<i64: 8, 64>}]} {
    %c0 = arith.constant 0 : index
    %c0_0 = arith.constant 0 : index
    %0 = vector.load %arg1[%c0, %c0_0] : memref<8x32xf32, #tpu.memory_space<vmem>>, vector<8x32xf32>
    %c0_1 = arith.constant 0 : index
    %c0_2 = arith.constant 0 : index
    %1 = vector.load %arg2[%c0_1, %c0_2] : memref<32x64xf32, #tpu.memory_space<vmem>>, vector<32x64xf32>
    %cst = arith.constant dense<0.000000e+00> : vector<8x64xf32>
    %2 = tpu.matmul %0, %1, %cst {dimension_numbers = #tpu.dot_dimension_numbers<[1], [0], [0], [1], [0, 0, 1, 1], [], []>} : vector<8x32xf32>, vector<32x64xf32>, vector<8x64xf32> -> vector<8x64xf32>
    %c0_3 = arith.constant 0 : index
    %c0_4 = arith.constant 0 : index
    %3 = vector.load %arg3[%c0_3, %c0_4] : memref<1x64xf32, #tpu.memory_space<vmem>>, vector<1x64xf32>
    %4 = vector.broadcast %3 : vector<1x64xf32> to vector<8x64xf32>
    %5 = arith.addf %2, %4 : vector<8x64xf32>
    %c0_5 = arith.constant 0 : index
    %c0_6 = arith.constant 0 : index
    %6 = vector.load %arg4[%c0_5, %c0_6] : memref<8x64xf32, #tpu.memory_space<vmem>>, vector<8x64xf32>
    tpu.vector_store %arg4[%c0_5, %c0_6], %5 {strides = array<i32>} : memref<8x64xf32, #tpu.memory_space<vmem>>, vector<8x64xf32>,
    return
  }
  func.func @transform_0(%arg0: i32) -> (i32, i32) {
    %c0_i32 = arith.constant 0 : i32
    %c0_i32_0 = arith.constant 0 : i32
    return %arg0, %c0_i32 : i32, i32
  }
  func.func @transform_1(%arg0: i32) -> (i32, i32) {
    %c0_i32 = arith.constant 0 : i32
    %c0_i32_0 = arith.constant 0 : i32
    %c0_i32_1 = arith.constant 0 : i32
    return %c0_i32, %c0_i32_0 : i32, i32
  }
  func.func @transform_2(%arg0: i32) -> (i32, i32) {
    %c0_i32 = arith.constant 0 : i32
    %c0_i32_0 = arith.constant 0 : i32
    %c0_i32_1 = arith.constant 0 : i32
    return %c0_i32, %c0_i32_0 : i32, i32
  }
  func.func @transform_3(%arg0: i32) -> (i32, i32) {
    %c0_i32 = arith.constant 0 : i32
    %c0_i32_0 = arith.constant 0 : i32
    return %arg0, %c0_i32 : i32, i32
  }
}

module attributes {stable_mosaic.version = 11 : i64} {
  func.func @_linear_kernel(%arg0: i32, %arg1: memref<8x64xf32, #tpu.memory_space<vmem>>, %arg2: memref<64x16xf32, #tpu.memory_space<vmem>>, %arg3: memref<1x16xf32, #tpu.memory_space<vmem>>, %arg4: memref<8x16xf32, #tpu.memory_space<vmem>>) attributes {dimension_semantics = [#tpu.dimension_semantics<parallel>], iteration_bounds = array<i64: 1>, scalar_prefetch = 0 : i64, scratch_operands = 0 : i64, tpu.core_type = #tpu.core_type<tc>, window_params = [{transform_indices = @transform_0, window_bounds = array<i64: 8, 64>}, {pipeline_mode = #tpu.pipeline_mode<synchronous>, transform_indices = @transform_1, window_bounds = array<i64: 64, 16>}, {pipeline_mode = #tpu.pipeline_mode<synchronous>, transform_indices = @transform_2, window_bounds = array<i64: 1, 16>}, {transform_indices = @transform_3, window_bounds = array<i64: 8, 16>}]} {
    %c0 = arith.constant 0 : index
    %c0_0 = arith.constant 0 : index
    %0 = vector.load %arg1[%c0, %c0_0] : memref<8x64xf32, #tpu.memory_space<vmem>>, vector<8x64xf32>
    %c0_1 = arith.constant 0 : index
    %c0_2 = arith.constant 0 : index
    %1 = vector.load %arg2[%c0_1, %c0_2] : memref<64x16xf32, #tpu.memory_space<vmem>>, vector<64x16xf32>
    %cst = arith.constant dense<0.000000e+00> : vector<8x16xf32>
    %2 = tpu.matmul %0, %1, %cst {dimension_numbers = #tpu.dot_dimension_numbers<[1], [0], [0], [1], [0, 0, 1, 1], [], []>} : vector<8x64xf32>, vector<64x16xf32>, vector<8x16xf32> -> vector<8x16xf32>
    %c0_3 = arith.constant 0 : index
    %c0_4 = arith.constant 0 : index
    %3 = vector.load %arg3[%c0_3, %c0_4] : memref<1x16xf32, #tpu.memory_space<vmem>>, vector<1x16xf32>
    %4 = vector.broadcast %3 : vector<1x16xf32> to vector<8x16xf32>
    %5 = arith.addf %2, %4 : vector<8x16xf32>
    %c0_5 = arith.constant 0 : index
    %c0_6 = arith.constant 0 : index
    %6 = vector.load %arg4[%c0_5, %c0_6] : memref<8x16xf32, #tpu.memory_space<vmem>>, vector<8x16xf32>
    tpu.vector_store %arg4[%c0_5, %c0_6], %5 {strides = array<i32>} : memref<8x16xf32, #tpu.memory_space<vmem>>, vector<8x16xf32>,
    return
  }
  func.func @transform_0(%arg0: i32) -> (i32, i32) {
    %c0_i32 = arith.constant 0 : i32
    %c0_i32_0 = arith.constant 0 : i32
    return %arg0, %c0_i32 : i32, i32
  }
  func.func @transform_1(%arg0: i32) -> (i32, i32) {
    %c0_i32 = arith.constant 0 : i32
    %c0_i32_0 = arith.constant 0 : i32
    %c0_i32_1 = arith.constant 0 : i32
    return %c0_i32, %c0_i32_0 : i32, i32
  }
  func.func @transform_2(%arg0: i32) -> (i32, i32) {
    %c0_i32 = arith.constant 0 : i32
    %c0_i32_0 = arith.constant 0 : i32
    %c0_i32_1 = arith.constant 0 : i32
    return %c0_i32, %c0_i32_0 : i32, i32
  }
  func.func @transform_3(%arg0: i32) -> (i32, i32) {
    %c0_i32 = arith.constant 0 : i32
    %c0_i32_0 = arith.constant 0 : i32
    return %arg0, %c0_i32 : i32, i32
  }
}

module attributes {stable_mosaic.version = 11 : i64} {
  func.func @_swish_kernel(%arg0: i32, %arg1: memref<1xf32, #tpu.memory_space<smem>>, %arg2: memref<1x128xf32, #tpu.memory_space<vmem>>, %arg3: memref<1x128xf32, #tpu.memory_space<vmem>>) attributes {dimension_semantics = [#tpu.dimension_semantics<parallel>], iteration_bounds = array<i64: 1>, scalar_prefetch = 0 : i64, scratch_operands = 0 : i64, tpu.core_type = #tpu.core_type<tc>, window_params = [{transform_indices = @transform_0, window_bounds = array<i64: 1>}, {transform_indices = @transform_1, window_bounds = array<i64: 1, 128>}, {transform_indices = @transform_2, window_bounds = array<i64: 1, 128>}]} {
    %c0 = arith.constant 0 : index
    %0 = memref.load %arg1[%c0] : memref<1xf32, #tpu.memory_space<smem>>
    %c0_0 = arith.constant 0 : index
    %c0_1 = arith.constant 0 : index
    %1 = vector.load %arg2[%c0_0, %c0_1] : memref<1x128xf32, #tpu.memory_space<vmem>>, vector<1x128xf32>
    %2 = vector.broadcast %0 : f32 to vector<1x128xf32>
    %3 = arith.mulf %2, %1 : vector<1x128xf32>
    %cst = arith.constant 0.000000e+00 : f32
    %4 = vector.broadcast %cst : f32 to vector<1x128xf32>
    %5 = arith.subf %4, %3 : vector<1x128xf32>
    %6 = math.exp %5 : vector<1x128xf32>
    %cst_2 = arith.constant 1.000000e+00 : f32
    %7 = vector.broadcast %cst_2 : f32 to vector<1x128xf32>
    %8 = arith.addf %7, %6 : vector<1x128xf32>
    %cst_3 = arith.constant 1.000000e+00 : f32
    %9 = vector.broadcast %cst_3 : f32 to vector<1x128xf32>
    %10 = arith.divf %9, %8 : vector<1x128xf32>
    %11 = arith.mulf %1, %10 : vector<1x128xf32>
    %c0_4 = arith.constant 0 : index
    %c0_5 = arith.constant 0 : index
    %12 = vector.load %arg3[%c0_4, %c0_5] : memref<1x128xf32, #tpu.memory_space<vmem>>, vector<1x128xf32>
    tpu.vector_store %arg3[%c0_4, %c0_5], %11 {strides = array<i32>} : memref<1x128xf32, #tpu.memory_space<vmem>>, vector<1x128xf32>,
    return
  }
  func.func @transform_0(%arg0: i32) -> i32 {
    %c0_i32 = arith.constant 0 : i32
    %c0_i32_0 = arith.constant 0 : i32
    return %c0_i32 : i32
  }
  func.func @transform_1(%arg0: i32) -> (i32, i32) {
    %c0_i32 = arith.constant 0 : i32
    %c0_i32_0 = arith.constant 0 : i32
    return %arg0, %c0_i32 : i32, i32
  }
  func.func @transform_2(%arg0: i32) -> (i32, i32) {
    %c0_i32 = arith.constant 0 : i32
    %c0_i32_0 = arith.constant 0 : i32
    return %arg0, %c0_i32 : i32, i32
  }
}

module attributes {stable_mosaic.version = 11 : i64} {
  func.func @_linear_kernel(%arg0: i32, %arg1: memref<8x16xf32, #tpu.memory_space<vmem>>, %arg2: memref<16x64xf32, #tpu.memory_space<vmem>>, %arg3: memref<1x64xf32, #tpu.memory_space<vmem>>, %arg4: memref<8x64xf32, #tpu.memory_space<vmem>>) attributes {dimension_semantics = [#tpu.dimension_semantics<parallel>], iteration_bounds = array<i64: 1>, scalar_prefetch = 0 : i64, scratch_operands = 0 : i64, tpu.core_type = #tpu.core_type<tc>, window_params = [{transform_indices = @transform_0, window_bounds = array<i64: 8, 16>}, {pipeline_mode = #tpu.pipeline_mode<synchronous>, transform_indices = @transform_1, window_bounds = array<i64: 16, 64>}, {pipeline_mode = #tpu.pipeline_mode<synchronous>, transform_indices = @transform_2, window_bounds = array<i64: 1, 64>}, {transform_indices = @transform_3, window_bounds = array<i64: 8, 64>}]} {
    %c0 = arith.constant 0 : index
    %c0_0 = arith.constant 0 : index
    %0 = vector.load %arg1[%c0, %c0_0] : memref<8x16xf32, #tpu.memory_space<vmem>>, vector<8x16xf32>
    %c0_1 = arith.constant 0 : index
    %c0_2 = arith.constant 0 : index
    %1 = vector.load %arg2[%c0_1, %c0_2] : memref<16x64xf32, #tpu.memory_space<vmem>>, vector<16x64xf32>
    %cst = arith.constant dense<0.000000e+00> : vector<8x64xf32>
    %2 = tpu.matmul %0, %1, %cst {dimension_numbers = #tpu.dot_dimension_numbers<[1], [0], [0], [1], [0, 0, 1, 1], [], []>} : vector<8x16xf32>, vector<16x64xf32>, vector<8x64xf32> -> vector<8x64xf32>
    %c0_3 = arith.constant 0 : index
    %c0_4 = arith.constant 0 : index
    %3 = vector.load %arg3[%c0_3, %c0_4] : memref<1x64xf32, #tpu.memory_space<vmem>>, vector<1x64xf32>
    %4 = vector.broadcast %3 : vector<1x64xf32> to vector<8x64xf32>
    %5 = arith.addf %2, %4 : vector<8x64xf32>
    %c0_5 = arith.constant 0 : index
    %c0_6 = arith.constant 0 : index
    %6 = vector.load %arg4[%c0_5, %c0_6] : memref<8x64xf32, #tpu.memory_space<vmem>>, vector<8x64xf32>
    tpu.vector_store %arg4[%c0_5, %c0_6], %5 {strides = array<i32>} : memref<8x64xf32, #tpu.memory_space<vmem>>, vector<8x64xf32>,
    return
  }
  func.func @transform_0(%arg0: i32) -> (i32, i32) {
    %c0_i32 = arith.constant 0 : i32
    %c0_i32_0 = arith.constant 0 : i32
    return %arg0, %c0_i32 : i32, i32
  }
  func.func @transform_1(%arg0: i32) -> (i32, i32) {
    %c0_i32 = arith.constant 0 : i32
    %c0_i32_0 = arith.constant 0 : i32
    %c0_i32_1 = arith.constant 0 : i32
    return %c0_i32, %c0_i32_0 : i32, i32
  }
  func.func @transform_2(%arg0: i32) -> (i32, i32) {
    %c0_i32 = arith.constant 0 : i32
    %c0_i32_0 = arith.constant 0 : i32
    %c0_i32_1 = arith.constant 0 : i32
    return %c0_i32, %c0_i32_0 : i32, i32
  }
  func.func @transform_3(%arg0: i32) -> (i32, i32) {
    %c0_i32 = arith.constant 0 : i32
    %c0_i32_0 = arith.constant 0 : i32
    return %arg0, %c0_i32 : i32, i32
  }
}

module attributes {stable_mosaic.version = 11 : i64} {
  func.func @_l2norm_kernel(%arg0: i32, %arg1: memref<8x16xf32, #tpu.memory_space<vmem>>, %arg2: memref<8x16xf32, #tpu.memory_space<vmem>>) attributes {dimension_semantics = [#tpu.dimension_semantics<parallel>], iteration_bounds = array<i64: 1>, scalar_prefetch = 0 : i64, scratch_operands = 0 : i64, tpu.core_type = #tpu.core_type<tc>, window_params = [{transform_indices = @transform_0, window_bounds = array<i64: 8, 16>}, {transform_indices = @transform_1, window_bounds = array<i64: 8, 16>}]} {
    %c0 = arith.constant 0 : index
    %c0_0 = arith.constant 0 : index
    %0 = vector.load %arg1[%c0, %c0_0] : memref<8x16xf32, #tpu.memory_space<vmem>>, vector<8x16xf32>
    %1 = arith.mulf %0, %0 : vector<8x16xf32>
    %cst = arith.constant dense<0.000000e+00> : vector<8xf32>
    %2 = vector.multi_reduction <add>, %1, %cst [1] : vector<8x16xf32> to vector<8xf32>
    %3 = vector.shape_cast %2 : vector<8xf32> to vector<8x1xf32>
    %4 = math.sqrt %3 : vector<8x1xf32>
    %5 = vector.broadcast %4 : vector<8x1xf32> to vector<8x16xf32>
    %6 = arith.divf %0, %5 : vector<8x16xf32>
    %c0_1 = arith.constant 0 : index
    %c0_2 = arith.constant 0 : index
    %7 = vector.load %arg2[%c0_1, %c0_2] : memref<8x16xf32, #tpu.memory_space<vmem>>, vector<8x16xf32>
    tpu.vector_store %arg2[%c0_1, %c0_2], %6 {strides = array<i32>} : memref<8x16xf32, #tpu.memory_space<vmem>>, vector<8x16xf32>,
    return
  }
  func.func @transform_0(%arg0: i32) -> (i32, i32) {
    %c0_i32 = arith.constant 0 : i32
    %c0_i32_0 = arith.constant 0 : i32
    return %arg0, %c0_i32 : i32, i32
  }
  func.func @transform_1(%arg0: i32) -> (i32, i32) {
    %c0_i32 = arith.constant 0 : i32
    %c0_i32_0 = arith.constant 0 : i32
    return %arg0, %c0_i32 : i32, i32
  }
}

module attributes {stable_mosaic.version = 11 : i64} {
  func.func @_swish_kernel(%arg0: i32, %arg1: memref<1xf32, #tpu.memory_space<smem>>, %arg2: memref<1x2048xf32, #tpu.memory_space<vmem>>, %arg3: memref<1x2048xf32, #tpu.memory_space<vmem>>) attributes {dimension_semantics = [#tpu.dimension_semantics<parallel>], iteration_bounds = array<i64: 1>, scalar_prefetch = 0 : i64, scratch_operands = 0 : i64, tpu.core_type = #tpu.core_type<tc>, window_params = [{transform_indices = @transform_0, window_bounds = array<i64: 1>}, {transform_indices = @transform_1, window_bounds = array<i64: 1, 2048>}, {transform_indices = @transform_2, window_bounds = array<i64: 1, 2048>}]} {
    %c0 = arith.constant 0 : index
    %0 = memref.load %arg1[%c0] : memref<1xf32, #tpu.memory_space<smem>>
    %c0_0 = arith.constant 0 : index
    %c0_1 = arith.constant 0 : index
    %1 = vector.load %arg2[%c0_0, %c0_1] : memref<1x2048xf32, #tpu.memory_space<vmem>>, vector<1x2048xf32>
    %2 = vector.broadcast %0 : f32 to vector<1x2048xf32>
    %3 = arith.mulf %2, %1 : vector<1x2048xf32>
    %cst = arith.constant 0.000000e+00 : f32
    %4 = vector.broadcast %cst : f32 to vector<1x2048xf32>
    %5 = arith.subf %4, %3 : vector<1x2048xf32>
    %6 = math.exp %5 : vector<1x2048xf32>
    %cst_2 = arith.constant 1.000000e+00 : f32
    %7 = vector.broadcast %cst_2 : f32 to vector<1x2048xf32>
    %8 = arith.addf %7, %6 : vector<1x2048xf32>
    %cst_3 = arith.constant 1.000000e+00 : f32
    %9 = vector.broadcast %cst_3 : f32 to vector<1x2048xf32>
    %10 = arith.divf %9, %8 : vector<1x2048xf32>
    %11 = arith.mulf %1, %10 : vector<1x2048xf32>
    %c0_4 = arith.constant 0 : index
    %c0_5 = arith.constant 0 : index
    %12 = vector.load %arg3[%c0_4, %c0_5] : memref<1x2048xf32, #tpu.memory_space<vmem>>, vector<1x2048xf32>
    tpu.vector_store %arg3[%c0_4, %c0_5], %11 {strides = array<i32>} : memref<1x2048xf32, #tpu.memory_space<vmem>>, vector<1x2048xf32>,
    return
  }
  func.func @transform_0(%arg0: i32) -> i32 {
    %c0_i32 = arith.constant 0 : i32
    %c0_i32_0 = arith.constant 0 : i32
    return %c0_i32 : i32
  }
  func.func @transform_1(%arg0: i32) -> (i32, i32) {
    %c0_i32 = arith.constant 0 : i32
    %c0_i32_0 = arith.constant 0 : i32
    return %arg0, %c0_i32 : i32, i32
  }
  func.func @transform_2(%arg0: i32) -> (i32, i32) {
    %c0_i32 = arith.constant 0 : i32
    %c0_i32_0 = arith.constant 0 : i32
    return %arg0, %c0_i32 : i32, i32
  }
}

module attributes {stable_mosaic.version = 11 : i64} {
  func.func @_linear_kernel(%arg0: i32, %arg1: memref<8x64xf32, #tpu.memory_space<vmem>>, %arg2: memref<64x256xf32, #tpu.memory_space<vmem>>, %arg3: memref<1x256xf32, #tpu.memory_space<vmem>>, %arg4: memref<8x256xf32, #tpu.memory_space<vmem>>) attributes {dimension_semantics = [#tpu.dimension_semantics<parallel>], iteration_bounds = array<i64: 1>, scalar_prefetch = 0 : i64, scratch_operands = 0 : i64, tpu.core_type = #tpu.core_type<tc>, window_params = [{transform_indices = @transform_0, window_bounds = array<i64: 8, 64>}, {pipeline_mode = #tpu.pipeline_mode<synchronous>, transform_indices = @transform_1, window_bounds = array<i64: 64, 256>}, {pipeline_mode = #tpu.pipeline_mode<synchronous>, transform_indices = @transform_2, window_bounds = array<i64: 1, 256>}, {transform_indices = @transform_3, window_bounds = array<i64: 8, 256>}]} {
    %c0 = arith.constant 0 : index
    %c0_0 = arith.constant 0 : index
    %0 = vector.load %arg1[%c0, %c0_0] : memref<8x64xf32, #tpu.memory_space<vmem>>, vector<8x64xf32>
    %c0_1 = arith.constant 0 : index
    %c0_2 = arith.constant 0 : index
    %1 = vector.load %arg2[%c0_1, %c0_2] : memref<64x256xf32, #tpu.memory_space<vmem>>, vector<64x256xf32>
    %cst = arith.constant dense<0.000000e+00> : vector<8x256xf32>
    %2 = tpu.matmul %0, %1, %cst {dimension_numbers = #tpu.dot_dimension_numbers<[1], [0], [0], [1], [0, 0, 1, 1], [], []>} : vector<8x64xf32>, vector<64x256xf32>, vector<8x256xf32> -> vector<8x256xf32>
    %c0_3 = arith.constant 0 : index
    %c0_4 = arith.constant 0 : index
    %3 = vector.load %arg3[%c0_3, %c0_4] : memref<1x256xf32, #tpu.memory_space<vmem>>, vector<1x256xf32>
    %4 = vector.broadcast %3 : vector<1x256xf32> to vector<8x256xf32>
    %5 = arith.addf %2, %4 : vector<8x256xf32>
    %c0_5 = arith.constant 0 : index
    %c0_6 = arith.constant 0 : index
    %6 = vector.load %arg4[%c0_5, %c0_6] : memref<8x256xf32, #tpu.memory_space<vmem>>, vector<8x256xf32>
    tpu.vector_store %arg4[%c0_5, %c0_6], %5 {strides = array<i32>} : memref<8x256xf32, #tpu.memory_space<vmem>>, vector<8x256xf32>,
    return
  }
  func.func @transform_0(%arg0: i32) -> (i32, i32) {
    %c0_i32 = arith.constant 0 : i32
    %c0_i32_0 = arith.constant 0 : i32
    return %arg0, %c0_i32 : i32, i32
  }
  func.func @transform_1(%arg0: i32) -> (i32, i32) {
    %c0_i32 = arith.constant 0 : i32
    %c0_i32_0 = arith.constant 0 : i32
    %c0_i32_1 = arith.constant 0 : i32
    return %c0_i32, %c0_i32_0 : i32, i32
  }
  func.func @transform_2(%arg0: i32) -> (i32, i32) {
    %c0_i32 = arith.constant 0 : i32
    %c0_i32_0 = arith.constant 0 : i32
    %c0_i32_1 = arith.constant 0 : i32
    return %c0_i32, %c0_i32_0 : i32, i32
  }
  func.func @transform_3(%arg0: i32) -> (i32, i32) {
    %c0_i32 = arith.constant 0 : i32
    %c0_i32_0 = arith.constant 0 : i32
    return %arg0, %c0_i32 : i32, i32
  }
}

</mosaic_0001>

<bundles_post_ra>
// kernel: sxrnet_lincos_forward.10
= control target key start
LH: loop header
LB: loop body
LE: loop exit
PB: predicated region body
PF: predicated region fallthrough
CT: control target
= control target key end

     0   :  { %v23_v7 = vlaneseq  ;;  %s60_s0 = inlined_call_operand.<no memory space> [shape: f32[1], index: 0, kind: input, shape index: {}]   ;;  %s61_s1 = inlined_call_operand.vmem [shape: f32[1,512], index: 1, kind: input, shape index: {}]   ;;  %s62_s2 = inlined_call_operand.vmem [shape: f32[1,512], index: 2, kind: output, shape index: {}]  }
   0x1   :  { %v13_v0 = vld [vmem:[%s61_s1] sm:$0xf]  ;;  %v14_v1 = vstv %s60_s0 }
   0x2   :  { %v15_v2 = vmul.f32 %v14_v1, %v13_v0  ;;  %vm25_vm0 = vcmp.lt.s32.totalorder %v23_v7, 512 }
   0x4   :  { %v16_v3 = vsub.f32 0.0, %v15_v2 }
   0x6   :  { %v17_v4 = vmul.f32 1.442695, %v16_v3 }
   0x8   :  { %32 = vpow2.f32 %v17_v4 }
  0x12   :  { %v33_v5 = vpop.eup %32 }
  0x13   :  { %v19_v6 = vadd.f32 1.0, %v33_v5 }
  0x15   :  { %34 = vrcp.f32 %v19_v6 }
  0x1f   :  { %v35_v8 = vpop.eup %34 }
  0x20   :  { %v22_v9 = vmul.f32 %v35_v8, %v13_v0 }
  0x22   :  { %27 = vst.msk [vmem:[%s62_s2] sm:$0xf] %vm25_vm0, %v22_v9 }

// kernel: sxrnet_lincos_forward.9
= control target key start
LH: loop header
LB: loop body
LE: loop exit
PB: predicated region body
PF: predicated region fallthrough
CT: control target
= control target key end

     0   :  { %v133_v0 = vmov 0.0|0.0   ;;  %vm134_vm0 = vmmov 0   ;;  %v135_v4 = vmov 0.0   ;;  %vm26_vm1 = vcmask 261120   ;;  %s177_s1 = inlined_call_operand.vmem [shape: f32[32,64], index: 1, kind: input, shape index: {}]   ;;  %s178_s0 = inlined_call_operand.vmem [shape: f32[8,32], index: 0, kind: input, shape index: {}]   ;;  %s179_s2 = inlined_call_operand.vmem [shape: f32[1,64], index: 2, kind: input, shape index: {}]   ;;  %s180_s3 = inlined_call_operand.vmem [shape: f32[8,64], index: 3, kind: output, shape index: {}]  }
   0x1   :  { %124 = vmatprep.subr.bf16.mxu0 %v133_v0  ;;  %v15_v1 = vld [vmem:[%s177_s1] sm:$0xff]  ;;  %v16_v2 = vld [vmem:[%s177_s1 + $0x8] sm:$0xff]  ;;  %v17_v3 = vld [vmem:[%s177_s1 + $0x10] sm:$0xff]  ;;  %121 = vmatprep.mubr.msk.f32.mxu0 %vm134_vm0, %v135_v4  ;;  %vm100_vm2 = vcmask 523264  }
   0x2   :  { %v125_v5 = vpack.c.bf16 %v16_v2, %v15_v1  ;;  %v18_v6 = vld [vmem:[%s177_s1 + $0x18] sm:$0xff]  ;;  %v14_v8 = vld [vmem:[%s178_s0] sm:$0xff] }
   0x3   :  { %v128_v7 = vpack.c.bf16 %v18_v6, %v17_v3  ;;  %v106_v9 = vld [vmem:[%s179_s2] ss:$0 sm:$0xff] }
   0x4   :  { %126 = vmatpush3.bf16.msra.mxu0 %v125_v5 }
   0x5   :  { %127 = vmatprep.subr.bf16.mxu0 %v133_v0 }
   0x8   :  { %129 = vmatpush3.bf16.msra.mxu0 %v128_v7 }
   0xb   :  { %122 = vmatmul.mubr.msk.f32.vlgmr.msra.gmra.mrb[0].mxu0 %vm26_vm1, %v14_v8 }
  0xde   :  { %v96_v10 = vpop.f32.mrb[0].mxu0 }
  0xdf   :  { %v97_v11 = vadd.f32 %v106_v9, %v96_v10  ;;  %v123_v12 = vpop.f32.mrb[1].mxu0 }
  0xe1   :  { %101 = vst.msk [vmem:[%s180_s3] sm:$0xff] %vm100_vm2, %v97_v11 }

// kernel: sxrnet_lincos_forward.11
= control target key start
LH: loop header
LB: loop body
LE: loop exit
PB: predicated region body
PF: predicated region fallthrough
CT: control target
= control target key end

     0   :  { %v155_v0 = vmov 0.0|0.0   ;;  %vm156_vm0 = vmmov 0   ;;  %v157_v4 = vmov 0.0   ;;  %vm30_vm1 = vcmask 523264   ;;  %s211_s1 = inlined_call_operand.vmem [shape: f32[64,16], index: 1, kind: input, shape index: {}]   ;;  %s212_s0 = inlined_call_operand.vmem [shape: f32[8,64], index: 0, kind: input, shape index: {}]   ;;  %s213_s2 = inlined_call_operand.vmem [shape: f32[1,16], index: 2, kind: input, shape index: {}]   ;;  %s214_s3 = inlined_call_operand.vmem [shape: f32[8,16], index: 3, kind: output, shape index: {}]  }
   0x1   :  { %140 = vmatprep.subr.bf16.mxu0 %v155_v0  ;;  %v15_v1 = vld [vmem:[%s211_s1] sm:$0xff]  ;;  %v16_v2 = vld [vmem:[%s211_s1 + $0x8] sm:$0xff]  ;;  %v17_v3 = vld [vmem:[%s211_s1 + $0x10] sm:$0xff]  ;;  %137 = vmatprep.mubr.msk.f32.mxu0 %vm156_vm0, %v157_v4  ;;  %vm104_vm2 = vcmask 130048  }
   0x2   :  { %v141_v5 = vpack.c.bf16 %v16_v2, %v15_v1  ;;  %v18_v6 = vld [vmem:[%s211_s1 + $0x18] sm:$0xff]  ;;  %v19_v8 = vld [vmem:[%s211_s1 + $0x20] sm:$0xff]  ;;  %v20_v9 = vld [vmem:[%s211_s1 + $0x28] sm:$0xff] }
   0x3   :  { %v144_v7 = vpack.c.bf16 %v18_v6, %v17_v3  ;;  %v147_v10 = vpack.c.bf16 %v20_v9, %v19_v8  ;;  %v21_v11 = vld [vmem:[%s211_s1 + $0x30] sm:$0xff]  ;;  %v22_v12 = vld [vmem:[%s211_s1 + $0x38] sm:$0xff]  ;;  %v14_v14 = vld [vmem:[%s212_s0] sm:$0xff] }
   0x4   :  { %142 = vmatpush3.bf16.msra.mxu0 %v141_v5  ;;  %v150_v13 = vpack.c.bf16 %v22_v12, %v21_v11  ;;  %v110_v15 = vld [vmem:[%s213_s2] ss:$0 sm:$0xff] }
   0x5   :  { %143 = vmatprep.subr.bf16.mxu0 %v155_v0 }
   0x8   :  { %145 = vmatpush3.bf16.msra.mxu0 %v144_v7 }
   0x9   :  { %146 = vmatprep.subr.bf16.mxu0 %v155_v0 }
   0xc   :  { %148 = vmatpush3.bf16.msra.mxu0 %v147_v10 }
   0xd   :  { %149 = vmatprep.subr.bf16.mxu0 %v155_v0 }
  0x10   :  { %151 = vmatpush3.bf16.msra.mxu0 %v150_v13 }
  0x13   :  { %138 = vmatmul.mubr.msk.f32.vlgmr.msra.gmra.mrb[0].mxu0 %vm30_vm1, %v14_v14 }
  0xe6   :  { %v100_v16 = vpop.f32.mrb[0].mxu0 }
  0xe7   :  { %v101_v17 = vadd.f32 %v110_v15, %v100_v16  ;;  %v139_v18 = vpop.f32.mrb[1].mxu0 }
  0xe9   :  { %105 = vst.msk [vmem:[%s214_s3] sm:$0xff] %vm104_vm2, %v101_v17 }

// kernel: sxrnet_lincos_forward.12
= control target key start
LH: loop header
LB: loop body
LE: loop exit
PB: predicated region body
PF: predicated region fallthrough
CT: control target
= control target key end

     0   :  { %s56_s0 = inlined_call_operand.<no memory space> [shape: f32[1], index: 0, kind: input, shape index: {}]   ;;  %s57_s1 = inlined_call_operand.vmem [shape: f32[1,128], index: 1, kind: input, shape index: {}]   ;;  %s58_s2 = inlined_call_operand.vmem [shape: f32[1,128], index: 2, kind: output, shape index: {}]  }
   0x1   :  { %v13_v0 = vld [vmem:[%s57_s1] sm:$0x1]  ;;  %v14_v1 = vstv %s56_s0 }
   0x2   :  { %v15_v2 = vmul.f32 %v14_v1, %v13_v0 }
   0x4   :  { %v16_v3 = vsub.f32 0.0, %v15_v2 }
   0x6   :  { %v17_v4 = vmul.f32 1.442695, %v16_v3 }
   0x8   :  { %28 = vpow2.f32 %v17_v4 }
  0x12   :  { %v29_v5 = vpop.eup %28 }
  0x13   :  { %v19_v6 = vadd.f32 1.0, %v29_v5 }
  0x15   :  { %30 = vrcp.f32 %v19_v6 }
  0x1f   :  { %v31_v7 = vpop.eup %30 }
  0x20   :  { %v22_v8 = vmul.f32 %v31_v7, %v13_v0 }
  0x22   :  { %23 = vst [vmem:[%s58_s2] sm:$0x1] %v22_v8 }

// kernel: sxrnet_lincos_forward.13
= control target key start
LH: loop header
LB: loop body
LE: loop exit
PB: predicated region body
PF: predicated region fallthrough
CT: control target
= control target key end

     0   :  { %vm10_vm0 = vcmask 130048   ;;  %s50_s0 = inlined_call_operand.vmem [shape: f32[8,16], index: 0, kind: input, shape index: {}]   ;;  %s51_s1 = inlined_call_operand.vmem [shape: f32[8,16], index: 1, kind: output, shape index: {}]  }
   0x1   :  { %v8_v0 = vld [vmem:[%s50_s0] sm:$0xff] }
   0x2   :  { %v9_v1 = vmul.f32 %v8_v0, %v8_v0 }
   0x4   :  { %v11_v2 = vsel %vm10_vm0, %v9_v1, 0.0 }
   0x5   :  { %12 = vadd.xlane.f32.xlu0 %v11_v2 }
  0x92   :  { %v13_v3 = vpop.xlane.xlu0 %12 }
  0x93   :  { %28 = vrsqrt.f32 %v13_v3  ;;  %vm16_vm1 = vcmp.eq.f32.partialorder %v13_v3, inf  ;;  %v19_v6 = vand.u32 2147483648, %v13_v3  ;;  %vm18_vm2 = vcmp.eq.f32.partialorder %v13_v3, 0.0 }
  0x9d   :  { %v29_v4 = vpop.eup %28 }
  0x9e   :  { %v15_v5 = vmul.f32 %v29_v4, %v13_v3 }
  0xa0   :  { %v17_v7 = vsel %vm16_vm1, %v13_v3, %v15_v5 }
  0xa1   :  { %v20_v8 = vsel %vm18_vm2, %v19_v6, %v17_v7 }
  0xa2   :  { %30 = vrcp.f32 %v20_v8 }
  0xac   :  { %v31_v9 = vpop.eup %30 }
  0xad   :  { %v22_v10 = vmul.f32 %v31_v9, %v8_v0 }
  0xaf   :  { %23 = vst.msk [vmem:[%s51_s1] sm:$0xff] %vm10_vm0, %v22_v10 }

// kernel: sxrnet_lincos_forward.14
= control target key start
LH: loop header
LB: loop body
LE: loop exit
PB: predicated region body
PF: predicated region fallthrough
CT: control target
= control target key end

     0   :  { %v122_v0 = vmov 0.0|0.0   ;;  %vm123_vm0 = vmmov 0   ;;  %v124_v3 = vmov 0.0   ;;  %vm24_vm1 = vcmask 130048   ;;  %s160_s1 = inlined_call_operand.vmem [shape: f32[16,64], index: 1, kind: input, shape index: {}]   ;;  %s161_s0 = inlined_call_operand.vmem [shape: f32[8,16], index: 0, kind: input, shape index: {}]   ;;  %s162_s2 = inlined_call_operand.vmem [shape: f32[1,64], index: 2, kind: input, shape index: {}]   ;;  %s163_s3 = inlined_call_operand.vmem [shape: f32[8,64], index: 3, kind: output, shape index: {}]  }
   0x1   :  { %116 = vmatprep.subr.bf16.mxu0 %v122_v0  ;;  %v15_v1 = vld [vmem:[%s160_s1] sm:$0xff]  ;;  %v16_v2 = vld [vmem:[%s160_s1 + $0x8] sm:$0xff]  ;;  %113 = vmatprep.mubr.msk.f32.mxu0 %vm123_vm0, %v124_v3  ;;  %vm98_vm2 = vcmask 523264  }
   0x2   :  { %v117_v4 = vpack.c.bf16 %v16_v2, %v15_v1  ;;  %v14_v5 = vld [vmem:[%s161_s0] sm:$0xff] }
   0x3   :  { %v104_v6 = vld [vmem:[%s162_s2] ss:$0 sm:$0xff] }
   0x4   :  { %118 = vmatpush3.bf16.msra.mxu0 %v117_v4 }
   0x7   :  { %114 = vmatmul.mubr.msk.f32.vlgmr.msra.gmra.mrb[0].mxu0 %vm24_vm1, %v14_v5 }
  0xda   :  { %v94_v7 = vpop.f32.mrb[0].mxu0 }
  0xdb   :  { %v95_v8 = vadd.f32 %v104_v6, %v94_v7  ;;  %v115_v9 = vpop.f32.mrb[1].mxu0 }
  0xdd   :  { %99 = vst.msk [vmem:[%s163_s3] sm:$0xff] %vm98_vm2, %v95_v8 }

// kernel: sxrnet_lincos_forward.17
= control target key start
LH: loop header
LB: loop body
LE: loop exit
PB: predicated region body
PF: predicated region fallthrough
CT: control target
= control target key end

     0   :  { %s76_s0 = inlined_call_operand.<no memory space> [shape: f32[1], index: 0, kind: input, shape index: {}]   ;;  %s77_s1 = inlined_call_operand.vmem [shape: f32[1,2048], index: 1, kind: input, shape index: {}]   ;;  %s78_s2 = inlined_call_operand.vmem [shape: f32[1,2048], index: 2, kind: output, shape index: {}]  }
   0x1   :  { %v13_v0 = vld [vmem:[%s77_s1] sm:$0xff]  ;;  %v15_v1 = vstv %s76_s0  ;;  %v14_v2 = vld [vmem:[%s77_s1 + $0x8] sm:$0xff] }
   0x2   :  { %v16_v3 = vmul.f32 %v15_v1, %v13_v0  ;;  %v17_v4 = vmul.f32 %v15_v1, %v14_v2 }
   0x4   :  { %v18_v5 = vsub.f32 0.0, %v16_v3  ;;  %v19_v6 = vsub.f32 0.0, %v17_v4 }
   0x6   :  { %v20_v7 = vmul.f32 1.442695, %v18_v5  ;;  %v22_v8 = vmul.f32 1.442695, %v19_v6 }
   0x8   :  { %38 = vpow2.f32 %v20_v7 }
   0x9   :  { %40 = vpow2.f32 %v22_v8 }
  0x12   :  { %v39_v9 = vpop.eup %38 }
  0x13   :  { %v41_v10 = vpop.eup %40  ;;  %v24_v11 = vadd.f32 1.0, %v39_v9 }
  0x14   :  { %v25_v12 = vadd.f32 1.0, %v41_v10 }
  0x15   :  { %42 = vrcp.f32 %v24_v11 }
  0x16   :  { %44 = vrcp.f32 %v25_v12 }
  0x1f   :  { %v43_v13 = vpop.eup %42 }
  0x20   :  { %v45_v14 = vpop.eup %44  ;;  %v30_v15 = vmul.f32 %v43_v13, %v13_v0 }
  0x21   :  { %v31_v16 = vmul.f32 %v45_v14, %v14_v2 }
  0x22   :  { %32 = vst [vmem:[%s78_s2] sm:$0xff] %v30_v15 }
  0x23   :  { %33 = vst [vmem:[%s78_s2 + $0x8] sm:$0xff] %v31_v16 }

// kernel: sxrnet_lincos_forward.16
= control target key start
LH: loop header
LB: loop body
LE: loop exit
PB: predicated region body
PF: predicated region fallthrough
CT: control target
= control target key end

     0   :  { %v142_v3 = vmov 0.0   ;;  %vm43_vm0 = vcmask 523264   ;;  %v33_v26 = vlaneseq  ;;  %s223_s1 = inlined_call_operand.vmem [shape: f32[64,256], index: 1, kind: input, shape index: {}]   ;;  %s224_s0 = inlined_call_operand.vmem [shape: f32[8,64], index: 0, kind: input, shape index: {}]   ;;  %s225_s2 = inlined_call_operand.vmem [shape: f32[1,256], index: 2, kind: input, shape index: {}]   ;;  %s226_s3 = inlined_call_operand.vmem [shape: f32[8,256], index: 3, kind: output, shape index: {}]  }
   0x1   :  { %v16_v0 = vld [vmem:[%s223_s1 + $0x8] sm:$0xff]  ;;  %v18_v1 = vld [vmem:[%s223_s1 + $0x18] sm:$0xff]  ;;  %v15_v2 = vld [vmem:[%s223_s1] sm:$0xff]  ;;  %111 = vmatprep.mubr.f32.mxu0 %v142_v3 }
   0x2   :  { %v125_v4 = vpack.c.bf16 %v18_v1, %v16_v0  ;;  %v17_v5 = vld [vmem:[%s223_s1 + $0x10] sm:$0xff]  ;;  %v20_v6 = vld [vmem:[%s223_s1 + $0x28] sm:$0xff]  ;;  %v22_v7 = vld [vmem:[%s223_s1 + $0x38] sm:$0xff]  ;;  %v34_v27 = vshrl.u32 %v33_v26, 7 }
   0x3   :  { %v127_v8 = vpack.c.bf16 %v17_v5, %v15_v2  ;;  %v129_v9 = vpack.c.bf16 %v22_v7, %v20_v6  ;;  %v19_v10 = vld [vmem:[%s223_s1 + $0x20] sm:$0xff]  ;;  %v21_v11 = vld [vmem:[%s223_s1 + $0x30] sm:$0xff]  ;;  %v24_v12 = vld [vmem:[%s223_s1 + $0x48] sm:$0xff] }
   0x4   :  { %126 = vmatprep.subr.bf16.mxu0 %v125_v4  ;;  %v26_v13 = vld [vmem:[%s223_s1 + $0x58] sm:$0xff]  ;;  %v131_v14 = vpack.c.bf16 %v21_v11, %v19_v10  ;;  %v23_v16 = vld [vmem:[%s223_s1 + $0x40] sm:$0xff]  ;;  %v25_v17 = vld [vmem:[%s223_s1 + $0x50] sm:$0xff]  ;;  %v35_v28 = vsub.s32 0, %v34_v27  ;;  %v39_v30 = vsub.s32 1, %v34_v27 }
   0x5   :  { %128 = vmatpush1.bf16.msra.mxu0 %v127_v8  ;;  %v133_v15 = vpack.c.bf16 %v26_v13, %v24_v12  ;;  %v28_v18 = vld [vmem:[%s223_s1 + $0x68] sm:$0xff]  ;;  %v30_v19 = vld [vmem:[%s223_s1 + $0x78] sm:$0xff]  ;;  %v135_v20 = vpack.c.bf16 %v25_v17, %v23_v16  ;;  %v27_v22 = vld [vmem:[%s223_s1 + $0x60] sm:$0xff] }
   0x6   :  { %130 = vmatprep.subr.bf16.mxu0 %v129_v9  ;;  %v137_v21 = vpack.c.bf16 %v30_v19, %v28_v18  ;;  %v29_v23 = vld [vmem:[%s223_s1 + $0x70] sm:$0xff]  ;;  %v14_v25 = vld [vmem:[%s224_s0] sm:$0xff] }
   0x7   :  { %v139_v24 = vpack.c.bf16 %v29_v23, %v27_v22  ;;  %v31_v29 = vld [vmem:[%s225_s2] sm:$0x3] }
   0x8   :  { %v36_v31 = vrot.slane %v31_v29, %v35_v28  ;;  %v40_v32 = vrot.slane %v31_v29, %v39_v30 }
   0x9   :  { %132 = vmatpush1.bf16.msra.mxu0 %v131_v14 }
   0xa   :  { %134 = vmatprep.subr.bf16.mxu0 %v133_v15 }
   0xd   :  { %136 = vmatpush1.bf16.msra.mxu0 %v135_v20 }
   0xe   :  { %138 = vmatprep.subr.bf16.mxu0 %v137_v21 }
  0x11   :  { %140 = vmatpush1.bf16.msra.mxu0 %v139_v24 }
  0x14   :  { %124 = vmatmul.mubr.msk.f32.vlgmr.msra.gmra.mrb[0].mxu0 %vm43_vm0, %v14_v25 }
  0xe7   :  { %v113_v33 = vpop.f32.mrb[0].mxu0 }
  0xe8   :  { %v114_v34 = vadd.f32 %v113_v33, %v36_v31  ;;  %v115_v35 = vpop.f32.mrb[1].mxu0 }
  0xe9   :  { %v116_v36 = vadd.f32 %v115_v35, %v40_v32 }
  0xea   :  { %118 = vst [vmem:[%s226_s3] sm:$0xff] %v114_v34 }
  0xeb   :  { %119 = vst [vmem:[%s226_s3 + $0x8] sm:$0xff] %v116_v36 }

</bundles_post_ra>
